<compile_context>
chip_gen: v7x
topology: tpu7x:2x2x1
jax: 0.10.0
libtpu: 0.0.40
codegen_flags: <defaults>
</compile_context>

<pallas_src>
import functools
import math

import jax
import jax.numpy as jnp
from jax.experimental import pallas as pl
from jax.experimental.pallas import tpu as pltpu


def _round_up(n, m):
    return ((n + m - 1) // m) * m


def _cellpro_kernel(x_ref, w_ref, out_ref, *scratch):
    """One LSTMCell step from zero state (bias=False), zero-state specialized.

    With (h0, c0) == 0:
        gates = x @ W_packed          (only [i, g, o]; f * c0 vanishes, W_hh dead)
        c     = sigmoid(i) * tanh(g)
        h     = sigmoid(o) * tanh(c)

    x_ref  : (B, H) f32        raw activations (pad fused here, not in the wrapper)
    w_ref  : (3, H_pad, tn)    packed, transposed, zero-padded [i, g, o] weights
    out_ref: (B, out_w) f32    out_w = H (single block) or tn (output-H grid)
    scratch: optional (B_pad, H_pad) f32 VMEM buffer, present iff padding needed.
    """
    if scratch:
        xs_ref, = scratch
        B, H = x_ref.shape

        # Zero-pad once at grid step 0; the scratch persists across grid steps.
        @pl.when(pl.program_id(0) == 0)
        def _():
            xs_ref[...] = jnp.zeros_like(xs_ref)
            xs_ref[0:B, 0:H] = x_ref[...]

        xp = xs_ref[...]
    else:
        xp = x_ref[...]

    # Three MXU matmuls over the full K = H_pad; f32 operands, f32 accumulation.
    i_pre = jnp.dot(xp, w_ref[0], preferred_element_type=jnp.float32)
    g_pre = jnp.dot(xp, w_ref[1], preferred_element_type=jnp.float32)
    o_pre = jnp.dot(xp, w_ref[2], preferred_element_type=jnp.float32)

    i_g = jax.nn.sigmoid(i_pre)
    g_g = jnp.tanh(g_pre)
    o_g = jax.nn.sigmoid(o_pre)

    c_new = i_g * g_g                       # forget-gate term f * c0 == 0
    h_new = o_g * jnp.tanh(c_new)

    rb, cb = out_ref.shape
    out_ref[...] = h_new[:rb, :cb].astype(out_ref.dtype)


def prepare_weights(w_ih, h_pad, dtype=jnp.float32):
    """One-time (param-prep) packing of the PyTorch weight_ih (4H, H).

    Keeps only the [i, g, o] gates (f is dead for a zero-state step), transposes
    each to (in, out), zero-pads both axes to h_pad, and stacks gate-major:
    result (3, h_pad, h_pad).  Column tiles of this slab are exactly what the
    output-H grid streams.
    """
    four_h, H = w_ih.shape
    assert four_h == 4 * H
    w4 = w_ih.reshape(4, H, H)                   # (gate, out, in), order [i, f, g, o]
    w3 = jnp.stack([w4[0], w4[2], w4[3]])        # keep [i, g, o]
    w3_t = jnp.transpose(w3, (0, 2, 1))          # (gate, in, out)
    pad = h_pad - H
    w3_t = jnp.pad(w3_t, ((0, 0), (0, pad), (0, pad)))
    return w3_t.astype(dtype)                    # (3, h_pad, h_pad)


def _pick_tile_n(h_pad, budget_bytes=8 << 20):
    """Largest multiple-of-128 divisor of h_pad whose (3, h_pad, tn) f32 weight
    tile fits the budget; h_pad itself if the whole slab fits (grid of 1)."""
    if 3 * h_pad * h_pad * 4 <= budget_bytes:
        return h_pad
    m = h_pad // 128
    for d in range(m, 0, -1):
        if m % d == 0 and 3 * h_pad * (128 * d) * 4 <= budget_bytes:
            return 128 * d
    return 128


@functools.partial(jax.jit, static_argnames=("tile_n",))
def cellpro_forward(x, w_packed, *, tile_n=None):
    """CellPro.forward (LSTM path) — single cell step from zero (h, c).

    x:        (B, H) float32.  Any B: batch many rows/tokens per call so the
              weight DMA and launch overhead amortize.
    w_packed: (3, H_pad, H_pad) float32 from prepare_weights().
    returns:  (B, H) float32 hidden state.
    """
    B, H = x.shape
    three, h_pad, h_pad2 = w_packed.shape
    assert three == 3 and h_pad == h_pad2 and h_pad >= H and h_pad % 128 == 0

    b_pad = _round_up(max(B, 1), 8)
    tn = tile_n if tile_n is not None else _pick_tile_n(h_pad)
    assert h_pad % tn == 0 and tn % 128 == 0
    num_tiles = h_pad // tn

    needs_pad = (B != b_pad) or (H != h_pad)
    # Single block -> emit exactly (B, H) (no wrapper slice).
    # Tiled -> emit the lane-dense padded slab; slice only if H != h_pad.
    out_w = H if num_tiles == 1 else h_pad
    out_block_w = H if num_tiles == 1 else tn

    scratch_shapes = []
    if needs_pad:
        scratch_shapes.append(pltpu.VMEM((b_pad, h_pad), jnp.float32))

    # Scoped-VMEM limit sized from the actual tiles (double-buffered weights,
    # activations, output tile, epilogue temps) with generous headroom; clamped
    # to 64 MiB so it is valid on every generation (v5e default is only 16 MiB).
    w_tile_bytes = 3 * h_pad * tn * 4
    est = (2 * w_tile_bytes + 2 * B * H * 4 + 2 * B * out_block_w * 4
           + (b_pad * h_pad * 4 if needs_pad else 0) + 6 * b_pad * tn * 4)
    vmem_limit = int(min(max(4 * est, 32 << 20), 64 << 20))

    out = pl.pallas_call(
        _cellpro_kernel,
        out_shape=jax.ShapeDtypeStruct((B, out_w), jnp.float32),
        grid=(num_tiles,),
        in_specs=[
            # x stays resident across output tiles (constant index map).
            pl.BlockSpec((B, H), lambda j: (0, 0)),
            # [i, g, o] weight columns for output tile j (streamed / double-buffered).
            pl.BlockSpec((3, h_pad, tn), lambda j: (0, 0, j)),
        ],
        out_specs=pl.BlockSpec((B, out_block_w), lambda j: (0, j)),
        scratch_shapes=tuple(scratch_shapes),
        compiler_params=pltpu.CompilerParams(
            dimension_semantics=("parallel",),
            vmem_limit_bytes=vmem_limit,
        ),
    )(x, w_packed)

    return out if out_w == H else out[:, :H]


def make_params(key, H, multiplier=4):
    """Deterministic reproduction of the module's weight init:
    uniform(-1/sqrt(1024), 1/sqrt(1024)) + eye(H) tiled `multiplier` times."""
    stdv = 1.0 / math.sqrt(1024.0)
    k1, k2 = jax.random.split(key)
    eye_rep = jnp.tile(jnp.eye(H, dtype=jnp.float32), (multiplier, 1))
    w_ih = jax.random.uniform(k1, (multiplier * H, H), jnp.float32, -stdv, stdv) + eye_rep
    w_hh = jax.random.uniform(k2, (multiplier * H, H), jnp.float32, -stdv, stdv) + eye_rep
    return w_ih, w_hh


def _reference(x, w_ih):
    """Pure-JAX f32 reference of one PyTorch LSTMCell step (bias=False, zero state)."""
    H = x.shape[1]
    gates = x @ w_ih.T                      # h0 == 0, so the W_hh term vanishes
    i = jax.nn.sigmoid(gates[:, 0 * H:1 * H])
    g = jnp.tanh(gates[:, 2 * H:3 * H])
    o = jax.nn.sigmoid(gates[:, 3 * H:4 * H])
    c = i * g                               # f-gate term multiplied by c0 == 0
    return o * jnp.tanh(c)


if __name__ == "__main__":
    key = jax.random.PRNGKey(0)
    kx, kw, kx2, kw2 = jax.random.split(key, 4)

    # --- shape implied by the module: batch=2, input_size == hidden_size = 32 ---
    B, H = 2, 32
    x = jax.random.normal(kx, (B, H), dtype=jnp.float32)
    # w_hh is created by the module but is dead for a zero-state step (never used).
    w_ih, w_hh = make_params(kw, H, multiplier=4)          # LSTM -> multiplier 4
    w_packed = prepare_weights(w_ih, _round_up(H, 128))    # one-time param prep

    hidden = jax.block_until_ready(cellpro_forward(x, w_packed))
    ref = _reference(x, w_ih)
    assert hidden.shape == (B, H)
    # f32 operands end-to-end; tolerance keeps margin for MXU pass behavior.
    assert jnp.allclose(hidden, ref, atol=1e-2, rtol=1e-2), \
        float(jnp.max(jnp.abs(hidden - ref)))

    # --- exercise the output-H tiled path (grid > 1) + padded-batch path ---
    B2, H2 = 4, 256
    x2 = jax.random.normal(kx2, (B2, H2), dtype=jnp.float32)
    w_ih2, _ = make_params(kw2, H2, multiplier=4)
    w_packed2 = prepare_weights(w_ih2, _round_up(H2, 128))
    hidden2 = jax.block_until_ready(cellpro_forward(x2, w_packed2, tile_n=128))
    ref2 = _reference(x2, w_ih2)
    assert hidden2.shape == (B2, H2)
    assert jnp.allclose(hidden2, ref2, atol=1e-2, rtol=1e-2), \
        float(jnp.max(jnp.abs(hidden2 - ref2)))

    print("KERNEL_OK")
</pallas_src>

<mosaic_0001>
module attributes {stable_mosaic.version = 11 : i64} {
  func.func @_cellpro_kernel(%arg0: i32, %arg1: memref<2x32xf32, #tpu.memory_space<vmem>>, %arg2: memref<3x128x128xf32, #tpu.memory_space<vmem>>, %arg3: memref<2x32xf32, #tpu.memory_space<vmem>>, %arg4: memref<8x128xf32, #tpu.memory_space<vmem>>) attributes {dimension_semantics = [#tpu.dimension_semantics<parallel>], iteration_bounds = array<i64: 1>, scalar_prefetch = 0 : i64, scratch_operands = 1 : i64, tpu.core_type = #tpu.core_type<tc>, window_params = [{pipeline_mode = #tpu.pipeline_mode<synchronous>, transform_indices = @transform_0, window_bounds = array<i64: 2, 32>}, {transform_indices = @transform_1, window_bounds = array<i64: 3, 128, 128>}, {transform_indices = @transform_2, window_bounds = array<i64: 2, 32>}]} {
    %c0_i32 = arith.constant 0 : i32
    %0 = arith.cmpi eq, %arg0, %c0_i32 : i32
    %1 = arith.extui %0 : i1 to i32
    %c0_i32_0 = arith.constant 0 : i32
    %2 = arith.cmpi ne, %1, %c0_i32_0 : i32
    scf.if %2 {
      %cst_15 = arith.constant 0.000000e+00 : f32
      %29 = vector.broadcast %cst_15 : f32 to vector<8x128xf32>
      %c0_16 = arith.constant 0 : index
      %c0_17 = arith.constant 0 : index
      %30 = vector.load %arg4[%c0_16, %c0_17] : memref<8x128xf32, #tpu.memory_space<vmem>>, vector<8x128xf32>
      tpu.vector_store %arg4[%c0_16, %c0_17], %29 {strides = array<i32>} : memref<8x128xf32, #tpu.memory_space<vmem>>, vector<8x128xf32>,
      %c0_18 = arith.constant 0 : index
      %c0_19 = arith.constant 0 : index
      %31 = vector.load %arg1[%c0_18, %c0_19] : memref<2x32xf32, #tpu.memory_space<vmem>>, vector<2x32xf32>
      %c0_20 = arith.constant 0 : index
      %c0_21 = arith.constant 0 : index
      %32 = vector.load %arg4[%c0_20, %c0_21] : memref<8x128xf32, #tpu.memory_space<vmem>>, vector<2x32xf32>
      tpu.vector_store %arg4[%c0_20, %c0_21], %31 {strides = array<i32>} : memref<8x128xf32, #tpu.memory_space<vmem>>, vector<2x32xf32>,
    } else {
    }
    %c0 = arith.constant 0 : index
    %c0_1 = arith.constant 0 : index
    %3 = vector.load %arg4[%c0, %c0_1] : memref<8x128xf32, #tpu.memory_space<vmem>>, vector<8x128xf32>
    %c0_2 = arith.constant 0 : index
    %c0_3 = arith.constant 0 : index
    %c0_4 = arith.constant 0 : index
    %4 = vector.load %arg2[%c0_2, %c0_3, %c0_4] : memref<3x128x128xf32, #tpu.memory_space<vmem>>, vector<1x128x128xf32>
    %5 = vector.shape_cast %4 : vector<1x128x128xf32> to vector<128x128xf32>
    %cst = arith.constant dense<0.000000e+00> : vector<8x128xf32>
    %6 = tpu.matmul %3, %5, %cst {dimension_numbers = #tpu.dot_dimension_numbers<[1], [0], [0], [1], [0, 0, 1, 1], [], []>} : vector<8x128xf32>, vector<128x128xf32>, vector<8x128xf32> -> vector<8x128xf32>
    %c1 = arith.constant 1 : index
    %c0_5 = arith.constant 0 : index
    %c0_6 = arith.constant 0 : index
    %7 = vector.load %arg2[%c1, %c0_5, %c0_6] : memref<3x128x128xf32, #tpu.memory_space<vmem>>, vector<1x128x128xf32>
    %8 = vector.shape_cast %7 : vector<1x128x128xf32> to vector<128x128xf32>
    %cst_7 = arith.constant dense<0.000000e+00> : vector<8x128xf32>
    %9 = tpu.matmul %3, %8, %cst_7 {dimension_numbers = #tpu.dot_dimension_numbers<[1], [0], [0], [1], [0, 0, 1, 1], [], []>} : vector<8x128xf32>, vector<128x128xf32>, vector<8x128xf32> -> vector<8x128xf32>
    %c2 = arith.constant 2 : index
    %c0_8 = arith.constant 0 : index
    %c0_9 = arith.constant 0 : index
    %10 = vector.load %arg2[%c2, %c0_8, %c0_9] : memref<3x128x128xf32, #tpu.memory_space<vmem>>, vector<1x128x128xf32>
    %11 = vector.shape_cast %10 : vector<1x128x128xf32> to vector<128x128xf32>
    %cst_10 = arith.constant dense<0.000000e+00> : vector<8x128xf32>
    %12 = tpu.matmul %3, %11, %cst_10 {dimension_numbers = #tpu.dot_dimension_numbers<[1], [0], [0], [1], [0, 0, 1, 1], [], []>} : vector<8x128xf32>, vector<128x128xf32>, vector<8x128xf32> -> vector<8x128xf32>
    %13 = arith.negf %6 : vector<8x128xf32>
    %14 = math.exp %13 : vector<8x128xf32>
    %cst_11 = arith.constant 1.000000e+00 : f32
    %15 = vector.broadcast %cst_11 : f32 to vector<8x128xf32>
    %16 = arith.addf %15, %14 : vector<8x128xf32>
    %17 = arith.divf %15, %16 : vector<8x128xf32>
    %18 = math.tanh %9 : vector<8x128xf32>
    %19 = arith.negf %12 : vector<8x128xf32>
    %20 = math.exp %19 : vector<8x128xf32>
    %cst_12 = arith.constant 1.000000e+00 : f32
    %21 = vector.broadcast %cst_12 : f32 to vector<8x128xf32>
    %22 = arith.addf %21, %20 : vector<8x128xf32>
    %23 = arith.divf %21, %22 : vector<8x128xf32>
    %24 = arith.mulf %17, %18 : vector<8x128xf32>
    %25 = math.tanh %24 : vector<8x128xf32>
    %26 = arith.mulf %23, %25 : vector<8x128xf32>
    %27 = vector.extract_strided_slice %26 {offsets = [0, 0], sizes = [2, 32], strides = [1, 1]} : vector<8x128xf32> to vector<2x32xf32>
    %c0_13 = arith.constant 0 : index
    %c0_14 = arith.constant 0 : index
    %28 = vector.load %arg3[%c0_13, %c0_14] : memref<2x32xf32, #tpu.memory_space<vmem>>, vector<2x32xf32>
    tpu.vector_store %arg3[%c0_13, %c0_14], %27 {strides = array<i32>} : memref<2x32xf32, #tpu.memory_space<vmem>>, vector<2x32xf32>,
    return
  }
  func.func @transform_0(%arg0: i32) -> (i32, i32) {
    %c0_i32 = arith.constant 0 : i32
    %c0_i32_0 = arith.constant 0 : i32
    %c0_i32_1 = arith.constant 0 : i32
    return %c0_i32, %c0_i32_0 : i32, i32
  }
  func.func @transform_1(%arg0: i32) -> (i32, i32, i32) {
    %c0_i32 = arith.constant 0 : i32
    %c0_i32_0 = arith.constant 0 : i32
    %c0_i32_1 = arith.constant 0 : i32
    return %c0_i32, %c0_i32_0, %arg0 : i32, i32, i32
  }
  func.func @transform_2(%arg0: i32) -> (i32, i32) {
    %c0_i32 = arith.constant 0 : i32
    %c0_i32_0 = arith.constant 0 : i32
    return %c0_i32, %arg0 : i32, i32
  }
}

</mosaic_0001>

<bundles_post_ra>
// kernel: cellpro_forward.1
= control target key start
LH: loop header
LB: loop body
LE: loop exit
PB: predicated region body
PF: predicated region fallthrough
CT: control target
= control target key end

     0   :  { %7 = vsyncpa [#allocation4], 0  ;;  %s762_s0 = inlined_call_operand.hbm [shape: f32[2,32], index: 0, kind: input, shape index: {}]   ;;  %s763_s1 = inlined_call_operand.hbm [shape: f32[3,128,128], index: 1, kind: input, shape index: {}]   ;;  %s764_s2 = inlined_call_operand.hbm [shape: f32[2,32], index: 2, kind: output, shape index: {}]  }
   0x1   :  { %8 = vsyncpa [#allocation7], 0 }
   0x2   :  { %9 = vsyncpa [#allocation5], 0  ;;  %s663_s9 = smov [#allocation3]   ;;  %s664_s11 = smov [#allocation6]  }
   0x3   :  { %s16_s10 = sshll.u32 %s663_s9, 4  ;;  %s25_s12 = sshll.u32 %s664_s11, 4  ;;  %s17_s10 = int_to_ptr.vmem [resolvable:$true] %s16_s10  ;;  %s686_s12 = int_to_ptr.vmem [resolvable:$true] %s25_s12 }
   0x4   :  { %s591_s15 = scalar_lea.hbm %s762_s0, 32 }
   0x5   :  { %p592_p0 = scmp.ne.s32.totalorder %s762_s0, %s591_s15  ;;  %p595_p1 = scmp.lt.u32.totalorder %s591_s15, %s762_s0 }
   0x7   :  { %p597_p2 = pnand %p595_p1, %p592_p0 }
   0x9   :  { %600 = shalt.err (!%p597_p2)
}
   0xa   :  { %s601_s20 = scalar_lea.vmem %s17_s10, 32  ;;  %p606_p4 = scmp.lt.s32.totalorder %s17_s10, %s17_s10 }
   0xb   :  { %p602_p3 = scmp.ne.s32.totalorder %s17_s10, %s601_s20  ;;  %p607_p5 = scmp.lt.s32.totalorder %s601_s20, %s601_s20 }
   0xd   :  { %p608_p6 = por %p607_p5, %p606_p4 }
   0xf   :  { %p609_p7 = pnand %p608_p6, %p602_p3 }
  0x11   :  { %612 = shalt.err (!%p609_p7)
}
  0x12   :  { %19 = dma.hbm_to_vmem [thread:$0]  %s762_s0, 32, %s17_s10, [#allocation4]  }
  0x13   :  { %s613_s25 = scalar_lea.hbm %s763_s1, 6144 }
  0x14   :  { %p614_p8 = scmp.ne.s32.totalorder %s763_s1, %s613_s25  ;;  %p617_p9 = scmp.lt.u32.totalorder %s613_s25, %s763_s1 }
  0x16   :  { %p619_p10 = pnand %p617_p9, %p614_p8 }
  0x18   :  { %622 = shalt.err (!%p619_p10)
}
  0x19   :  { %s623_s30 = scalar_lea.vmem %s686_s12, 6144  ;;  %p628_p12 = scmp.lt.s32.totalorder %s686_s12, %s686_s12 }
  0x1a   :  { %p624_p11 = scmp.ne.s32.totalorder %s686_s12, %s623_s30  ;;  %p629_p13 = scmp.lt.s32.totalorder %s623_s30, %s623_s30 }
  0x1c   :  { %p630_p0 = por %p629_p13, %p628_p12 }
  0x1e   :  { %p631_p1 = pnand %p630_p0, %p624_p11 }
  0x20   :  { %634 = shalt.err (!%p631_p1)
}
  0x21   :  { %s665_s0 = smov 128   ;;  %s666_s3 = smov 8  }
  0x22   :  { %31 = dma.hbm_to_vmem [thread:$0]  %s763_s1, 6144, %s686_s12, [#allocation7], %s665_s0, %s665_s0, %s666_s3  }
  0x23   :  { %657 = dma.done.wait [#allocation4], 32  }
  0x24   :  { %658 = vsyncadd [#allocation4], 4294967264 }
  0x25   :  { %659 = dma.done.wait [#allocation7], 6144  }
  0x26   :  { %660 = vsyncadd [#allocation7], 4294961152  ;;  %v667_v0 = vmov 0.0|0.0   ;;  %v668_v1 = vmov 0.0   ;;  %vm669_vm0 = vmmov 0   ;;  %v47_v2 = vld [vmem:[#allocation6] sm:$0xff] }
  0x27   :  { %499 = vmatprep.subr.bf16.mxu0 %v667_v0  ;;  %523 = vmatprep.subr.bf16.mxu1 %v667_v0  ;;  %42 = vst [vmem:[#allocation2] sm:$0xff] %v668_v1  ;;  %v48_v3 = vld [vmem:[#allocation6 + $0x8] sm:$0xff]  ;;  %v49_v4 = vld [vmem:[#allocation6 + $0x10] sm:$0xff]  ;;  %v50_v6 = vld [vmem:[#allocation6 + $0x18] sm:$0xff]  ;;  %vm44_vm1 = vcmask 254976   ;;  %s670_s1 = smov [#allocation8]  }
  0x28   :  { %426 = vmatprep.mubr.msk.f32.mxu0 %vm669_vm0, %v668_v1  ;;  %461 = vmatprep.mubr.msk.f32.mxu1 %vm669_vm0, %v668_v1  ;;  %v500_v5 = vpack.c.bf16 %v48_v3, %v47_v2  ;;  %v503_v7 = vpack.c.bf16 %v50_v6, %v49_v4  ;;  %v134_v8 = vld [vmem:[#allocation6 + $0x80] sm:$0xff]  ;;  %v135_v9 = vld [vmem:[#allocation6 + $0x88] sm:$0xff]  ;;  %v136_v13 = vld [vmem:[#allocation6 + $0x90] sm:$0xff]  ;;  %s331_s6 = sshll.u32 %s670_s1, 4  ;;  %s332_s6 = int_to_ptr.vmem [resolvable:$true] %s331_s6 }
  0x29   :  { %v51_v10 = vld [vmem:[#allocation6 + $0x20] sm:$0xff]  ;;  %v52_v11 = vld [vmem:[#allocation6 + $0x28] sm:$0xff]  ;;  %v524_v12 = vpack.c.bf16 %v135_v9, %v134_v8  ;;  %v137_v14 = vld [vmem:[#allocation6 + $0x98] sm:$0xff]  ;;  %s635_s7 = scalar_lea.vmem %s332_s6, 32  ;;  %p640_p3 = scmp.lt.s32.totalorder %s332_s6, %s332_s6 }
  0x2a   :  { %501 = vmatpush3.bf16.msra.mxu0 %v500_v5  ;;  %v527_v15 = vpack.c.bf16 %v137_v14, %v136_v13  ;;  %v506_v16 = vpack.c.bf16 %v52_v11, %v51_v10  ;;  %v138_v17 = vld [vmem:[#allocation6 + $0xa0] sm:$0xff]  ;;  %v139_v18 = vld [vmem:[#allocation6 + $0xa8] sm:$0xff]  ;;  %v53_v19 = vld [vmem:[#allocation6 + $0x30] sm:$0xff]  ;;  %p636_p2 = scmp.ne.s32.totalorder %s332_s6, %s635_s7  ;;  %p641_p4 = scmp.lt.s32.totalorder %s635_s7, %s635_s7 }
  0x2b   :  { %502 = vmatprep.subr.bf16.mxu0 %v667_v0  ;;  %525 = vmatpush3.bf16.msra.mxu1 %v524_v12  ;;  %v54_v20 = vld [vmem:[#allocation6 + $0x38] sm:$0xff]  ;;  %v530_v22 = vpack.c.bf16 %v139_v18, %v138_v17  ;;  %v140_v24 = vld [vmem:[#allocation6 + $0xb0] sm:$0xff]  ;;  %v55_v26 = vld [vmem:[#allocation6 + $0x40] sm:$0xff] }
  0x2c   :  { %526 = vmatprep.subr.bf16.mxu1 %v667_v0  ;;  %v43_v21 = vld [vmem:[#allocation3] sm:$0x3]  ;;  %v509_v23 = vpack.c.bf16 %v54_v20, %v53_v19  ;;  %v56_v27 = vld [vmem:[#allocation6 + $0x48] sm:$0xff]  ;;  %v142_v30 = vld [vmem:[#allocation6 + $0xc0] sm:$0xff]  ;;  %p642_p5 = por %p641_p4, %p640_p3 }
  0x2d   :  { %45 = vst.msk [vmem:[#allocation2] sm:$0x3] %vm44_vm1, %v43_v21  ;;  %v141_v25 = vld [vmem:[#allocation6 + $0xb8] sm:$0xff]  ;;  %v512_v29 = vpack.c.bf16 %v56_v27, %v55_v26  ;;  %v143_v31 = vld [vmem:[#allocation6 + $0xc8] sm:$0xff]  ;;  %v57_v32 = vld [vmem:[#allocation6 + $0x50] sm:$0xff] }
  0x2e   :  { %504 = vmatpush3.bf16.msra.mxu0 %v503_v7  ;;  %v533_v28 = vpack.c.bf16 %v141_v25, %v140_v24  ;;  %v58_v33 = vld [vmem:[#allocation6 + $0x58] sm:$0xff]  ;;  %v536_v34 = vpack.c.bf16 %v143_v31, %v142_v30  ;;  %v144_v36 = vld [vmem:[#allocation6 + $0xd0] sm:$0xff]  ;;  %v59_v38 = vld [vmem:[#allocation6 + $0x60] sm:$0xff]  ;;  %p643_p6 = pnand %p642_p5, %p636_p2 }
  0x2f   :  { %505 = vmatprep.subr.bf16.mxu0 %v667_v0  ;;  %528 = vmatpush3.bf16.msra.mxu1 %v527_v15  ;;  %v515_v35 = vpack.c.bf16 %v58_v33, %v57_v32  ;;  %v145_v37 = vld [vmem:[#allocation6 + $0xd8] sm:$0xff]  ;;  %v60_v39 = vld [vmem:[#allocation6 + $0x68] sm:$0xff]  ;;  %v146_v42 = vld [vmem:[#allocation6 + $0xe0] sm:$0xff] }
  0x30   :  { %529 = vmatprep.subr.bf16.mxu1 %v667_v0  ;;  %v539_v40 = vpack.c.bf16 %v145_v37, %v144_v36  ;;  %v518_v41 = vpack.c.bf16 %v60_v39, %v59_v38  ;;  %v147_v43 = vld [vmem:[#allocation6 + $0xe8] sm:$0xff]  ;;  %v61_v44 = vld [vmem:[#allocation6 + $0x70] sm:$0xff]  ;;  %v62_v45 = vld [vmem:[#allocation6 + $0x78] sm:$0xff] }
  0x31   :  { %v542_v46 = vpack.c.bf16 %v147_v43, %v146_v42  ;;  %v521_v47 = vpack.c.bf16 %v62_v45, %v61_v44  ;;  %v148_v48 = vld [vmem:[#allocation6 + $0xf0] sm:$0xff]  ;;  %v149_v49 = vld [vmem:[#allocation6 + $0xf8] sm:$0xff]  ;;  %v221_v50 = vld [vmem:[#allocation6 + $0x100] sm:$0xff] }
  0x32   :  { %507 = vmatpush3.bf16.msra.mxu0 %v506_v16  ;;  %v222_v51 = vld [vmem:[#allocation6 + $0x108] sm:$0xff]  ;;  %v545_v52 = vpack.c.bf16 %v149_v49, %v148_v48  ;;  %v223_v55 = vld [vmem:[#allocation6 + $0x110] sm:$0xff]  ;;  %v224_v56 = vld [vmem:[#allocation6 + $0x118] sm:$0xff] }
  0x33   :  { %508 = vmatprep.subr.bf16.mxu0 %v667_v0  ;;  %531 = vmatpush3.bf16.msra.mxu1 %v530_v22  ;;  %v548_v54 = vpack.c.bf16 %v222_v51, %v221_v50  ;;  %v551_v57 = vpack.c.bf16 %v224_v56, %v223_v55  ;;  %v225_v58 = vld [vmem:[#allocation6 + $0x120] sm:$0xff]  ;;  %v226_v59 = vld [vmem:[#allocation6 + $0x128] sm:$0xff]  ;;  %v227_v61 = vld [vmem:[#allocation6 + $0x130] sm:$0xff] }
  0x34   :  { %532 = vmatprep.subr.bf16.mxu1 %v667_v0  ;;  %v46_v53 = vld [vmem:[#allocation2] sm:$0xff]  ;;  %v554_v60 = vpack.c.bf16 %v226_v59, %v225_v58  ;;  %v229_v2 = vld [vmem:[#allocation6 + $0x140] sm:$0xff]  ;;  %v230_v3 = vld [vmem:[#allocation6 + $0x148] sm:$0xff] }
  0x35   :  { %v228_v62 = vld [vmem:[#allocation6 + $0x138] sm:$0xff]  ;;  %v560_v4 = vpack.c.bf16 %v230_v3, %v229_v2  ;;  %v233_v7 = vld [vmem:[#allocation6 + $0x160] sm:$0xff]  ;;  %v234_v8 = vld [vmem:[#allocation6 + $0x168] sm:$0xff] }
  0x36   :  { %510 = vmatpush3.bf16.msra.mxu0 %v509_v23  ;;  %v557_v63 = vpack.c.bf16 %v228_v62, %v227_v61  ;;  %v232_v5 = vld [vmem:[#allocation6 + $0x158] sm:$0xff]  ;;  %v566_v9 = vpack.c.bf16 %v234_v8, %v233_v7  ;;  %v235_v10 = vld [vmem:[#allocation6 + $0x170] sm:$0xff] }
  0x37   :  { %511 = vmatprep.subr.bf16.mxu0 %v667_v0  ;;  %534 = vmatpush3.bf16.msra.mxu1 %v533_v28  ;;  %v236_v11 = vld [vmem:[#allocation6 + $0x178] sm:$0xff] }
  0x38   :  { %535 = vmatprep.subr.bf16.mxu1 %v667_v0  ;;  %v569_v12 = vpack.c.bf16 %v236_v11, %v235_v10 }
  0x3a   :  { %513 = vmatpush3.bf16.msra.mxu0 %v512_v29 }
  0x3b   :  { %514 = vmatprep.subr.bf16.mxu0 %v667_v0  ;;  %537 = vmatpush3.bf16.msra.mxu1 %v536_v34 }
  0x3c   :  { %538 = vmatprep.subr.bf16.mxu1 %v667_v0 }
  0x3e   :  { %516 = vmatpush3.bf16.msra.mxu0 %v515_v35 }
  0x3f   :  { %517 = vmatprep.subr.bf16.mxu0 %v667_v0  ;;  %540 = vmatpush3.bf16.msra.mxu1 %v539_v40 }
  0x40   :  { %541 = vmatprep.subr.bf16.mxu1 %v667_v0 }
  0x42   :  { %519 = vmatpush3.bf16.msra.mxu0 %v518_v41 }
  0x43   :  { %520 = vmatprep.subr.bf16.mxu0 %v667_v0  ;;  %543 = vmatpush3.bf16.msra.mxu1 %v542_v46 }
  0x44   :  { %544 = vmatprep.subr.bf16.mxu1 %v667_v0 }
  0x46   :  { %522 = vmatpush3.bf16.msra.mxu0 %v521_v47 }
  0x47   :  { %547 = vmatprep.subr.bf16.mxu0 %v667_v0  ;;  %546 = vmatpush3.bf16.msra.mxu1 %v545_v52 }
  0x49   :  { %427 = vmatmul.mubr.f32.vlgmr.msra.gmra.mrb[0].mxu0 %v46_v53 }
  0x4a   :  { %549 = vmatpush3.bf16.msra.mxu0 %v548_v54  ;;  %496 = vmatprep.mubr.msk.f32.mxu0 %vm669_vm0, %v668_v1  ;;  %v231_v1 = vld [vmem:[#allocation6 + $0x150] sm:$0xff] }
  0x4b   :  { %550 = vmatprep.subr.bf16.mxu0 %v667_v0  ;;  %462 = vmatmul.mubr.f32.vlgmr.msra.gmra.mrb[0].mxu1 %v46_v53  ;;  %v563_v6 = vpack.c.bf16 %v232_v5, %v231_v1 }
  0x4e   :  { %552 = vmatpush3.bf16.msra.mxu0 %v551_v57 }
  0x4f   :  { %553 = vmatprep.subr.bf16.mxu0 %v667_v0 }
  0x52   :  { %555 = vmatpush3.bf16.msra.mxu0 %v554_v60 }
  0x53   :  { %556 = vmatprep.subr.bf16.mxu0 %v667_v0 }
  0x56   :  { %558 = vmatpush3.bf16.msra.mxu0 %v557_v63 }
  0x57   :  { %559 = vmatprep.subr.bf16.mxu0 %v667_v0 }
  0x5a   :  { %561 = vmatpush3.bf16.msra.mxu0 %v560_v4 }
  0x5b   :  { %562 = vmatprep.subr.bf16.mxu0 %v667_v0 }
  0x5e   :  { %564 = vmatpush3.bf16.msra.mxu0 %v563_v6 }
  0x5f   :  { %565 = vmatprep.subr.bf16.mxu0 %v667_v0 }
  0x62   :  { %567 = vmatpush3.bf16.msra.mxu0 %v566_v9 }
  0x63   :  { %568 = vmatprep.subr.bf16.mxu0 %v667_v0 }
  0x66   :  { %570 = vmatpush3.bf16.msra.mxu0 %v569_v12 }
  0x69   :  { %497 = vmatmul.mubr.f32.vlgmr.msra.gmra.mrb[2].mxu0 %v46_v53 }
 0x11c   :  { %v129_v13 = vpop.f32.mrb[0].mxu0 }
 0x11d   :  { %v341_v14 = vmul.f32 -1.442695, %v129_v13  ;;  %v428_v15 = vpop.f32.mrb[1].mxu0 }
 0x11e   :  { %v216_v16 = vpop.f32.mrb[0].mxu1 }
 0x11f   :  { %579 = vpow2.f32 %v341_v14  ;;  %v463_v17 = vpop.f32.mrb[1].mxu1 }
 0x120   :  { %581 = vtanh.f32 %v216_v16 }
 0x129   :  { %v580_v18 = vpop.eup %579 }
 0x12a   :  { %v310_v19 = vadd.f32 1.0, %v580_v18  ;;  %v582_v20 = vpop.eup %581 }
 0x12c   :  { %583 = vrcp.f32 %v310_v19 }
 0x136   :  { %v584_v21 = vpop.eup %583 }
 0x137   :  { %v320_v22 = vmul.f32 %v584_v21, %v582_v20 }
 0x13c   :  { %v303_v23 = vpop.f32.mrb[2].mxu0 }
 0x13d   :  { %v342_v24 = vmul.f32 -1.442695, %v303_v23  ;;  %v498_v25 = vpop.f32.mrb[3].mxu0 }
 0x13f   :  { %585 = vpow2.f32 %v342_v24 }
 0x140   :  { %587 = vtanh.f32 %v320_v22 }
 0x149   :  { %v586_v0 = vpop.eup %585 }
 0x14a   :  { %v317_v26 = vadd.f32 1.0, %v586_v0  ;;  %v588_v27 = vpop.eup %587 }
 0x14c   :  { %589 = vrcp.f32 %v317_v26 }
 0x156   :  { %v590_v28 = vpop.eup %589 }
 0x157   :  { %v322_v29 = vmul.f32 %v590_v28, %v588_v27 }
 0x159   :  { %324 = vst.msk [vmem:[#allocation8] sm:$0x3] %vm44_vm1, %v322_v29 }
 0x15a   :  { %646 = shalt.err (!%p643_p6)
}
 0x15b   :  { %s647_s10 = scalar_lea.hbm %s764_s2, 32 }
 0x15c   :  { %p648_p7 = scmp.ne.s32.totalorder %s764_s2, %s647_s10  ;;  %p651_p8 = scmp.lt.u32.totalorder %s647_s10, %s764_s2 }
 0x15e   :  { %p653_p9 = pnand %p651_p8, %p648_p7 }
 0x160   :  { %656 = shalt.err (!%p653_p9)
}
 0x161   :  { %334 = dma.vmem_to_hbm [thread:$0]  %s332_s6, 32, %s764_s2, [#allocation5]  }
 0x162   :  { %661 = dma.done.wait [#allocation5], 32  }
 0x163   :  { %662 = vsyncadd [#allocation5], 4294967264 }
 0x164   :  { %338 = vsyncpa [#allocation4], 1 }
 0x165   :  { %339 = vsyncpa [#allocation7], 1 }
 0x166   :  { %340 = vsyncpa [#allocation5], 1 }

</bundles_post_ra>
